<compile_context>
chip_gen: v7x
topology: tpu7x:2x2x1
jax: 0.10.0
libtpu: 0.0.40
codegen_flags: <defaults>
</compile_context>

<pallas_src>
import jax
import jax.numpy as jnp
from jax.experimental import pallas as pl
from jax.experimental.pallas import tpu as pltpu


def _striatum_kernel(thal_ref, it_ref, w_th_ref, w_it_ref, b_ref, out_ref):
    # logits = thal @ W_eff_th + IT @ W_eff_it + b_eff     -> (TB, 2)
    logits = (jnp.dot(thal_ref[...], w_th_ref[...],
                      preferred_element_type=jnp.float32)
              + jnp.dot(it_ref[...], w_it_ref[...],
                        preferred_element_type=jnp.float32)
              + b_ref[...])
    out_ref[...] = jax.nn.sigmoid(logits)        # (TB, 2), lane-fused store


def _round_up(x, m):
    return ((x + m - 1) // m) * m


def _choose_batch_tile(B, batch_tile):
    """Pick the batch tile TB (multiple of 8, or the full batch)."""
    if B <= batch_tile:
        # Fits in one tile.  If the batch is large enough, split it in two
        # 8-aligned tiles so the parallel grid axis feeds both v7x TensorCores.
        if B >= 512 and B % 8 == 0:
            return _round_up(pl.cdiv(B, 2), 8)
        return B                                     # full-dim block, always legal
    # Large batch: biggest tile <= batch_tile, >= 2 grid steps.
    return min(batch_tile, _round_up(pl.cdiv(B, 2), 8))


def striatum_forward(thalamic_pre, IT_pre, params, *, batch_tile=1024):
    """Striatum_lNN forward in a single Pallas kernel.

    thalamic_pre: (B, input_s)   float32
    IT_pre:       (B, IT_inpt_s) float32
    Returns (rwd_pred, noCortex_rwd_pred) with torch .squeeze() semantics.
    """
    B, input_s = thalamic_pre.shape
    it_s = IT_pre.shape[1]
    h = params["W_th"].shape[1]

    # --- host-side algebraic collapse (tiny matmuls, done once) -------------
    # Head weights in "concat([thal_post, it_post]) @ W_rwd" form, fused with
    # the habituation head: column 0 = rwd, column 1 = habituation.
    w_head_th = jnp.concatenate([params["W_rwd"][:h, :], params["W_hab"]],
                                axis=1)                                   # (h, 2)
    w_head_it = jnp.concatenate([params["W_rwd"][h:, :],
                                 jnp.zeros_like(params["W_hab"])],
                                axis=1)                                   # (h, 2)
    b_head = jnp.concatenate([params["b_rwd"], params["b_hab"]], axis=1)  # (1, 2)

    # No hidden nonlinearity -> precompose the whole affine map.
    W_eff_th = params["W_th"] @ w_head_th                                 # (input_s, 2)
    W_eff_it = params["W_it"] @ w_head_it                                 # (it_s, 2)
    b_eff = params["b_th"] @ w_head_th + params["b_it"] @ w_head_it + b_head  # (1, 2)

    # --- batch tiling --------------------------------------------------------
    TB = _choose_batch_tile(B, batch_tile)
    grid = (pl.cdiv(B, TB),)
    # TODO(synk): for TB <= 512 with many grid steps, pipeline_mode=pl.Buffered(3)
    # on the batched input specs would hide DMA jitter; unnecessary at TB >= 1024.

    resident = lambda shape: pl.BlockSpec(shape, lambda i: (0, 0))  # VMEM-resident weights
    batched = lambda shape: pl.BlockSpec(shape, lambda i: (i, 0))   # tiled over batch

    out = pl.pallas_call(
        _striatum_kernel,
        out_shape=jax.ShapeDtypeStruct((B, 2), jnp.float32),
        grid=grid,
        in_specs=[
            batched((TB, input_s)),     # thalamic_pre
            batched((TB, it_s)),        # IT_pre
            resident((input_s, 2)),     # W_eff_th
            resident((it_s, 2)),        # W_eff_it
            resident((1, 2)),           # b_eff
        ],
        out_specs=batched((TB, 2)),
        compiler_params=pltpu.CompilerParams(
            dimension_semantics=("parallel",)),
    )(thalamic_pre, IT_pre, W_eff_th, W_eff_it, b_eff)

    rwd_pred = jnp.squeeze(out[:, 0])           # matches torch .squeeze()
    nocortex_rwd_pred = jnp.squeeze(out[:, 1])
    return rwd_pred, nocortex_rwd_pred


def init_params(key, input_s, IT_inpt_s, h_size):
    """Deterministic synthetic init mimicking nn.Linear (uniform +-1/sqrt(fan_in))
    plus the custom bias init (randn*0.1 - 5) on the two prediction heads."""
    ks = jax.random.split(key, 10)

    def lin(kw, kb, fan_in, fan_out):
        bound = 1.0 / jnp.sqrt(fan_in)
        W = jax.random.uniform(kw, (fan_in, fan_out), jnp.float32, -bound, bound)
        b = jax.random.uniform(kb, (1, fan_out), jnp.float32, -bound, bound)
        return W, b

    W_th, b_th = lin(ks[0], ks[1], input_s, h_size)
    W_it, b_it = lin(ks[2], ks[3], IT_inpt_s, h_size)
    W_hab, _ = lin(ks[4], ks[5], h_size, 1)
    W_rwd, _ = lin(ks[6], ks[7], 2 * h_size, 1)
    # custom bias init: randn(1)*0.1 - 5
    b_rwd = jax.random.normal(ks[8], (1, 1), jnp.float32) * 0.1 - 5.0
    b_hab = jax.random.normal(ks[9], (1, 1), jnp.float32) * 0.1 - 5.0

    return dict(W_th=W_th, b_th=b_th,
                W_it=W_it, b_it=b_it,
                W_rwd=W_rwd, b_rwd=b_rwd,
                W_hab=W_hab, b_hab=b_hab)


def _reference_forward(thalamic_pre, IT_pre, params):
    """Plain-JAX mirror of the PyTorch forward (no fusion), for checking."""
    thal_post = thalamic_pre @ params["W_th"] + params["b_th"]
    it_post = IT_pre @ params["W_it"] + params["b_it"]
    comb = jnp.concatenate([thal_post, it_post], axis=1)
    rwd = jax.nn.sigmoid(comb @ params["W_rwd"] + params["b_rwd"]).squeeze()
    noc = jax.nn.sigmoid(thal_post @ params["W_hab"] + params["b_hab"]).squeeze()
    return rwd, noc


if __name__ == "__main__":
    # TODO(synk): update()/Adam optimizer (training path) is not translated;
    # this is the forward pass only.
    key = jax.random.PRNGKey(0)
    input_s = 16      # thalamic input size
    IT_inpt_s = 32    # IT (cortical) input size
    h_size = 32

    k_p, k_x1, k_x2, k_y1, k_y2 = jax.random.split(key, 5)
    params = init_params(k_p, input_s, IT_inpt_s, h_size)

    # --- small-batch case (single grid step, TB == B) -----------------------
    B = 2
    thalamic_pre = jax.random.normal(k_x1, (B, input_s), jnp.float32)
    IT_pre = jax.random.normal(k_x2, (B, IT_inpt_s), jnp.float32)

    rwd_pred, nocortex_rwd_pred = striatum_forward(thalamic_pre, IT_pre, params)
    jax.block_until_ready((rwd_pred, nocortex_rwd_pred))

    ref_rwd, ref_noc = _reference_forward(thalamic_pre, IT_pre, params)
    assert rwd_pred.shape == ref_rwd.shape
    assert nocortex_rwd_pred.shape == ref_noc.shape
    assert jnp.allclose(rwd_pred, ref_rwd, atol=2e-5), "rwd_pred mismatch"
    assert jnp.allclose(nocortex_rwd_pred, ref_noc, atol=2e-5), "noCortex mismatch"

    # --- multi-tile case with a partial last tile (exercises the grid path) --
    B2 = 20
    thal2 = jax.random.normal(k_y1, (B2, input_s), jnp.float32)
    it2 = jax.random.normal(k_y2, (B2, IT_inpt_s), jnp.float32)
    rwd2, noc2 = striatum_forward(thal2, it2, params, batch_tile=8)  # TB=8, grid=3
    jax.block_until_ready((rwd2, noc2))
    ref_rwd2, ref_noc2 = _reference_forward(thal2, it2, params)
    assert jnp.allclose(rwd2, ref_rwd2, atol=2e-5), "tiled rwd_pred mismatch"
    assert jnp.allclose(noc2, ref_noc2, atol=2e-5), "tiled noCortex mismatch"

    print("KERNEL_OK")
</pallas_src>

<mosaic_0001>
module attributes {stable_mosaic.version = 11 : i64} {
  func.func @_striatum_kernel(%arg0: i32, %arg1: memref<2x16xf32, #tpu.memory_space<vmem>>, %arg2: memref<2x32xf32, #tpu.memory_space<vmem>>, %arg3: memref<16x2xf32, #tpu.memory_space<vmem>>, %arg4: memref<32x2xf32, #tpu.memory_space<vmem>>, %arg5: memref<1x2xf32, #tpu.memory_space<vmem>>, %arg6: memref<2x2xf32, #tpu.memory_space<vmem>>) attributes {dimension_semantics = [#tpu.dimension_semantics<parallel>], iteration_bounds = array<i64: 1>, scalar_prefetch = 0 : i64, scratch_operands = 0 : i64, tpu.core_type = #tpu.core_type<tc>, window_params = [{transform_indices = @transform_0, window_bounds = array<i64: 2, 16>}, {transform_indices = @transform_1, window_bounds = array<i64: 2, 32>}, {pipeline_mode = #tpu.pipeline_mode<synchronous>, transform_indices = @transform_2, window_bounds = array<i64: 16, 2>}, {pipeline_mode = #tpu.pipeline_mode<synchronous>, transform_indices = @transform_3, window_bounds = array<i64: 32, 2>}, {pipeline_mode = #tpu.pipeline_mode<synchronous>, transform_indices = @transform_4, window_bounds = array<i64: 1, 2>}, {transform_indices = @transform_5, window_bounds = array<i64: 2, 2>}]} {
    %c0 = arith.constant 0 : index
    %c0_0 = arith.constant 0 : index
    %0 = vector.load %arg1[%c0, %c0_0] : memref<2x16xf32, #tpu.memory_space<vmem>>, vector<2x16xf32>
    %c0_1 = arith.constant 0 : index
    %c0_2 = arith.constant 0 : index
    %1 = vector.load %arg3[%c0_1, %c0_2] : memref<16x2xf32, #tpu.memory_space<vmem>>, vector<16x2xf32>
    %cst = arith.constant dense<0.000000e+00> : vector<2x2xf32>
    %2 = tpu.matmul %0, %1, %cst {dimension_numbers = #tpu.dot_dimension_numbers<[1], [0], [0], [1], [0, 0, 1, 1], [], []>} : vector<2x16xf32>, vector<16x2xf32>, vector<2x2xf32> -> vector<2x2xf32>
    %c0_3 = arith.constant 0 : index
    %c0_4 = arith.constant 0 : index
    %3 = vector.load %arg2[%c0_3, %c0_4] : memref<2x32xf32, #tpu.memory_space<vmem>>, vector<2x32xf32>
    %c0_5 = arith.constant 0 : index
    %c0_6 = arith.constant 0 : index
    %4 = vector.load %arg4[%c0_5, %c0_6] : memref<32x2xf32, #tpu.memory_space<vmem>>, vector<32x2xf32>
    %cst_7 = arith.constant dense<0.000000e+00> : vector<2x2xf32>
    %5 = tpu.matmul %3, %4, %cst_7 {dimension_numbers = #tpu.dot_dimension_numbers<[1], [0], [0], [1], [0, 0, 1, 1], [], []>} : vector<2x32xf32>, vector<32x2xf32>, vector<2x2xf32> -> vector<2x2xf32>
    %6 = arith.addf %2, %5 : vector<2x2xf32>
    %c0_8 = arith.constant 0 : index
    %c0_9 = arith.constant 0 : index
    %7 = vector.load %arg5[%c0_8, %c0_9] : memref<1x2xf32, #tpu.memory_space<vmem>>, vector<1x2xf32>
    %8 = vector.broadcast %7 : vector<1x2xf32> to vector<2x2xf32>
    %9 = arith.addf %6, %8 : vector<2x2xf32>
    %10 = arith.negf %9 : vector<2x2xf32>
    %11 = math.exp %10 : vector<2x2xf32>
    %cst_10 = arith.constant 1.000000e+00 : f32
    %12 = vector.broadcast %cst_10 : f32 to vector<2x2xf32>
    %13 = arith.addf %12, %11 : vector<2x2xf32>
    %14 = arith.divf %12, %13 : vector<2x2xf32>
    %c0_11 = arith.constant 0 : index
    %c0_12 = arith.constant 0 : index
    %15 = vector.load %arg6[%c0_11, %c0_12] : memref<2x2xf32, #tpu.memory_space<vmem>>, vector<2x2xf32>
    tpu.vector_store %arg6[%c0_11, %c0_12], %14 {strides = array<i32>} : memref<2x2xf32, #tpu.memory_space<vmem>>, vector<2x2xf32>,
    return
  }
  func.func @transform_0(%arg0: i32) -> (i32, i32) {
    %c0_i32 = arith.constant 0 : i32
    %c0_i32_0 = arith.constant 0 : i32
    return %arg0, %c0_i32 : i32, i32
  }
  func.func @transform_1(%arg0: i32) -> (i32, i32) {
    %c0_i32 = arith.constant 0 : i32
    %c0_i32_0 = arith.constant 0 : i32
    return %arg0, %c0_i32 : i32, i32
  }
  func.func @transform_2(%arg0: i32) -> (i32, i32) {
    %c0_i32 = arith.constant 0 : i32
    %c0_i32_0 = arith.constant 0 : i32
    %c0_i32_1 = arith.constant 0 : i32
    return %c0_i32, %c0_i32_0 : i32, i32
  }
  func.func @transform_3(%arg0: i32) -> (i32, i32) {
    %c0_i32 = arith.constant 0 : i32
    %c0_i32_0 = arith.constant 0 : i32
    %c0_i32_1 = arith.constant 0 : i32
    return %c0_i32, %c0_i32_0 : i32, i32
  }
  func.func @transform_4(%arg0: i32) -> (i32, i32) {
    %c0_i32 = arith.constant 0 : i32
    %c0_i32_0 = arith.constant 0 : i32
    %c0_i32_1 = arith.constant 0 : i32
    return %c0_i32, %c0_i32_0 : i32, i32
  }
  func.func @transform_5(%arg0: i32) -> (i32, i32) {
    %c0_i32 = arith.constant 0 : i32
    %c0_i32_0 = arith.constant 0 : i32
    return %arg0, %c0_i32 : i32, i32
  }
}

</mosaic_0001>

<bundles_post_ra>
// kernel: tpu_custom_call.1
= control target key start
LH: loop header
LB: loop body
LE: loop exit
PB: predicated region body
PF: predicated region fallthrough
CT: control target
= control target key end

     0   :  { %v278_v3 = vmov 0.0|0.0   ;;  %vm279_vm0 = vmmov 0   ;;  %v280_v9 = vmov 0.0   ;;  %s351_s0 = inlined_call_operand.vmem [shape: f32[2,16], index: 0, kind: input, shape index: {}]   ;;  %s352_s1 = inlined_call_operand.vmem [shape: f32[2,32], index: 1, kind: input, shape index: {}]   ;;  %s353_s2 = inlined_call_operand.vmem [shape: f32[16,2], index: 2, kind: input, shape index: {}]   ;;  %s354_s3 = inlined_call_operand.vmem [shape: f32[32,2], index: 3, kind: input, shape index: {}]   ;;  %s355_s4 = inlined_call_operand.vmem [shape: f32[1,2], index: 4, kind: input, shape index: {}]   ;;  %s356_s5 = inlined_call_operand.hbm [shape: f32[2,2], index: 5, kind: output, shape index: {}]  }
   0x1   :  { %v25_v0 = vld [vmem:[%s354_s3] sm:$0xff]  ;;  %v26_v1 = vld [vmem:[%s354_s3 + $0x8] sm:$0xff]  ;;  %237 = vmatprep.subr.bf16.mxu0 %v278_v3  ;;  %243 = vmatprep.subr.bf16.mxu1 %v278_v3  ;;  %v27_v6 = vld [vmem:[%s354_s3 + $0x10] sm:$0xff] }
   0x2   :  { %v22_v2 = vld [vmem:[%s353_s2] sm:$0xff]  ;;  %v238_v4 = vpack.c.bf16 %v26_v1, %v25_v0  ;;  %v23_v5 = vld [vmem:[%s353_s2 + $0x8] sm:$0xff]  ;;  %v28_v7 = vld [vmem:[%s354_s3 + $0x18] sm:$0xff]  ;;  %234 = vmatprep.mubr.msk.f32.mxu1 %vm279_vm0, %v280_v9  ;;  %227 = vmatprep.mubr.msk.f32.mxu0 %vm279_vm0, %v280_v9 }
   0x3   :  { %v244_v8 = vpack.c.bf16 %v23_v5, %v22_v2 }
   0x4   :  { %10 = vsyncpa [#allocation3], 0  ;;  %239 = vmatpush3.bf16.msra.mxu0 %v238_v4  ;;  %v241_v10 = vpack.c.bf16 %v28_v7, %v27_v6  ;;  %v21_v11 = vld [vmem:[%s351_s0] sm:$0x3]  ;;  %vm103_vm1 = vcmask 130048   ;;  %vm29_vm2 = vcmask 261120  }
   0x5   :  { %240 = vmatprep.subr.bf16.mxu0 %v278_v3  ;;  %245 = vmatpush3.bf16.msra.mxu1 %v244_v8  ;;  %v24_v12 = vld [vmem:[%s352_s1] sm:$0x3]  ;;  %s281_s0 = smov [#allocation2]   ;;  %vm191_vm3 = vcmask 9216  }
   0x6   :  { %v209_v16 = vld [vmem:[%s355_s4] ss:$0 sm:$0xff]  ;;  %s199_s9 = sshll.u32 %s281_s0, 4  ;;  %s200_s9 = int_to_ptr.vmem [resolvable:$true] %s199_s9 }
   0x7   :  { %s254_s1 = scalar_lea.vmem %s200_s9, 32  ;;  %p259_p1 = scmp.lt.s32.totalorder %s200_s9, %s200_s9 }
   0x8   :  { %242 = vmatpush3.bf16.msra.mxu0 %v241_v10  ;;  %235 = vmatmul.mubr.msk.f32.vlgmr.msra.gmra.mrb[0].mxu1 %vm103_vm1, %v21_v11  ;;  %p255_p0 = scmp.ne.s32.totalorder %s200_s9, %s254_s1  ;;  %p260_p2 = scmp.lt.s32.totalorder %s254_s1, %s254_s1 }
   0xa   :  { %p261_p3 = por %p260_p2, %p259_p1 }
   0xb   :  { %228 = vmatmul.mubr.msk.f32.vlgmr.msra.gmra.mrb[0].mxu0 %vm29_vm2, %v24_v12 }
   0xc   :  { %p262_p4 = pnand %p261_p3, %p255_p0 }
  0xdb   :  { %v173_v13 = vpop.f32.mrb[0].mxu1 }
  0xdc   :  { %v236_v14 = vpop.f32.mrb[1].mxu1 }
  0xde   :  { %v99_v15 = vpop.f32.mrb[0].mxu0 }
  0xdf   :  { %v174_v17 = vadd.f32 %v173_v13, %v99_v15  ;;  %v229_v18 = vpop.f32.mrb[1].mxu0 }
  0xe1   :  { %v184_v19 = vadd.f32 %v209_v16, %v174_v17 }
  0xe3   :  { %v210_v20 = vmul.f32 -1.442695, %v184_v19 }
  0xe5   :  { %250 = vpow2.f32 %v210_v20 }
  0xef   :  { %v251_v21 = vpop.eup %250 }
  0xf0   :  { %v188_v22 = vadd.f32 1.0, %v251_v21 }
  0xf2   :  { %252 = vrcp.f32 %v188_v22 }
  0xfc   :  { %v253_v23 = vpop.eup %252 }
  0xfd   :  { %192 = vst.msk [vmem:[#allocation2] sm:$0x3] %vm191_vm3, %v253_v23 }
  0xfe   :  { %265 = shalt.err (!%p262_p4)
}
  0xff   :  { %s266_s11 = scalar_lea.hbm %s356_s5, 32 }
 0x100   :  { %p267_p5 = scmp.ne.s32.totalorder %s356_s5, %s266_s11  ;;  %p270_p6 = scmp.lt.u32.totalorder %s266_s11, %s356_s5 }
 0x102   :  { %p272_p7 = pnand %p270_p6, %p267_p5 }
 0x104   :  { %275 = shalt.err (!%p272_p7)
}
 0x105   :  { %202 = dma.vmem_to_hbm [thread:$0]  %s200_s9, 32, %s356_s5, [#allocation3]  }
 0x106   :  { %276 = dma.done.wait [#allocation3], 32  }
 0x107   :  { %277 = vsyncadd [#allocation3], 4294967264 }
 0x108   :  { %206 = vsyncpa [#allocation3], 1 }

</bundles_post_ra>
